<compile_context>
chip_gen: v5e
topology: v5e:2x2
jax: 0.10.0
libtpu: 0.0.40
codegen_flags: <defaults>
</compile_context>

<pallas_src>
import functools

import jax
import jax.numpy as jnp
from jax.experimental import pallas as pl
from jax.experimental.pallas import tpu as pltpu


def _round_up(x, m):
    return (x + m - 1) // m * m


def _actor_greedy_kernel(pid_ref, x_ref, w1_ref, w1p_ref, b1_ref, w2_ref,
                         b2_ref, out_ref, *, n_actions):
    # In-kernel f32 -> bf16 cast (VPU); HBM carries the f32 input exactly once.
    x = x_ref[...].astype(jnp.bfloat16)                             # [TB, D]
    h = jnp.dot(x, w1_ref[...], preferred_element_type=jnp.float32)

    # Player one-hot folded in-kernel: one_hot(p) @ W1_player == W1_player[p].
    b1_eff = b1_ref[...] + w1p_ref[pl.ds(pid_ref[0], 1), :]         # [1, Hp] f32
    h = jnp.maximum(h + b1_eff, 0.0)                                # [TB, Hp] f32

    # logits = hidden @ W2 + b2   (bf16 MXU operands, f32 accumulation)
    logits = jnp.dot(h.astype(w2_ref.dtype), w2_ref[...],
                     preferred_element_type=jnp.float32)
    logits = logits + b2_ref[...]                                   # [TB, Ap] f32

    # Greedy action = argmax over the real (unpadded) action lanes; ties break
    # to the first index, matching torch.argmax.
    lane = jax.lax.broadcasted_iota(jnp.int32, logits.shape, dimension=1)
    valid = lane < n_actions
    masked_logits = jnp.where(valid, logits, -jnp.inf)
    max_val = jnp.max(masked_logits, axis=-1, keepdims=True)
    is_max = jnp.logical_and(masked_logits == max_val, valid)
    masked_idx = jnp.where(is_max, lane, jnp.iinfo(jnp.int32).max)
    act = jnp.min(masked_idx, axis=-1, keepdims=True)               # [TB, 1] i32

    # Single lane-dense store: real logits in lanes [0, A), the argmax index
    # (as f32, exact for small ints) packed into spare lane A.
    out_ref[...] = jnp.where(lane == n_actions, act.astype(jnp.float32), logits)


def agent_greedy_actions(player_id, game_states, params):
    """Pallas implementation of AgentWrapper.forward (mcts_steps == 0 path).

    player_id   : scalar int32 (which player is acting)
    game_states : [B, C, H, W] float32 board feature planes (NCHW)
    returns     : (actions [B] int32, logits [B, A] float32)
    """
    w1, w1p, b1, w2, b2 = (params["w1"], params["w1_player"], params["b1"],
                           params["w2"], params["b2"])
    n_actions = params["n_actions"]

    B = game_states.shape[0]
    D, Hp = w1.shape
    Ap = w2.shape[1]
    P = w1p.shape[0]

    # Flatten only (free reshape); the bf16 cast happens inside the kernel.
    x = game_states.reshape(B, -1)                                  # [B, D] f32
    assert x.shape[1] == D

    # Scalar-prefetch operand: player id in SMEM, shape (1,) int32.
    pid = jnp.asarray(player_id, jnp.int32).reshape((1,))

    # Batch tiling (no wrapper-side pad; last block may be partial):
    #   tiny batch  -> single 8-row-aligned step (f32 sublane granule)
    #   larger      -> at least 2 grid steps so both v7x TensorCores get work,
    #                  capped at 1024 rows per step (~10 MiB VMEM with f32 x).
    if B <= 256:
        TB = _round_up(B, 8)
    else:
        TB = min(1024, _round_up(pl.cdiv(B, 2), 256))
    grid = (pl.cdiv(B, TB),)

    out = pl.pallas_call(
        functools.partial(_actor_greedy_kernel, n_actions=n_actions),
        out_shape=jax.ShapeDtypeStruct((B, Ap), jnp.float32),
        grid_spec=pltpu.PrefetchScalarGridSpec(
            num_scalar_prefetch=1,
            grid=grid,
            in_specs=[
                pl.BlockSpec((TB, D), lambda i, pid: (i, 0)),   # x tile (pipelined)
                pl.BlockSpec((D, Hp), lambda i, pid: (0, 0)),   # W1 (resident)
                pl.BlockSpec((P, Hp), lambda i, pid: (0, 0)),   # W1_player (resident)
                pl.BlockSpec((1, Hp), lambda i, pid: (0, 0)),   # b1
                pl.BlockSpec((Hp, Ap), lambda i, pid: (0, 0)),  # W2 (resident)
                pl.BlockSpec((1, Ap), lambda i, pid: (0, 0)),   # b2
            ],
            out_specs=pl.BlockSpec((TB, Ap), lambda i, pid: (i, 0)),
        ),
        compiler_params=pltpu.CompilerParams(
            dimension_semantics=("parallel",),
            vmem_limit_bytes=32 * 1024 * 1024,
        ),
    )(pid, x, w1, w1p, b1, w2, b2)

    logits = out[:, :n_actions]
    actions = out[:, n_actions].astype(jnp.int32)
    return actions, logits


def init_params(key, in_features, hidden, n_actions, n_players):
    """Weights stored in the kernel-friendly layout:
       - W1 split into board part (D, Hp) and player part (P, Hp)
       - hidden / action dims zero-padded to lane multiples (padding is inert)
       - matmul weights in bf16, biases / player rows in f32."""
    k1, kp, k2, k3, k4 = jax.random.split(key, 5)
    Hp = _round_up(hidden, 128)
    Ap = _round_up(n_actions + 1, 128)   # +1 spare lane carries the argmax idx
    s1 = 1.0 / jnp.sqrt(jnp.float32(in_features + n_players))
    s2 = 1.0 / jnp.sqrt(jnp.float32(hidden))

    w1 = jax.random.normal(k1, (in_features, hidden), jnp.float32) * s1
    w1p = jax.random.normal(kp, (n_players, hidden), jnp.float32) * s1
    b1 = jax.random.normal(k2, (1, hidden), jnp.float32) * 0.01
    w2 = jax.random.normal(k3, (hidden, n_actions), jnp.float32) * s2
    b2 = jax.random.normal(k4, (1, n_actions), jnp.float32) * 0.01

    w1 = jnp.pad(w1, ((0, 0), (0, Hp - hidden))).astype(jnp.bfloat16)
    w1p = jnp.pad(w1p, ((0, 0), (0, Hp - hidden)))                  # f32
    b1 = jnp.pad(b1, ((0, 0), (0, Hp - hidden)))
    w2 = jnp.pad(w2, ((0, Hp - hidden), (0, Ap - n_actions))).astype(jnp.bfloat16)
    b2 = jnp.pad(b2, ((0, 0), (0, Ap - n_actions)))

    return {"w1": w1, "w1_player": w1p, "b1": b1, "w2": w2, "b2": b2,
            "n_actions": n_actions, "n_players": n_players}


if __name__ == "__main__":
    # Small synthetic shapes consistent with a board-game agent:
    # batch=2 game states, 4 feature planes, 16x16 board, 32 hidden, 16 actions.
    B, C, H, W = 2, 4, 16, 16
    HIDDEN, N_ACTIONS, N_PLAYERS = 32, 16, 2

    key = jax.random.PRNGKey(0)
    k_x, k_p = jax.random.split(key)
    game_states = jax.random.normal(k_x, (B, C, H, W), jnp.float32)
    player_id = jnp.int32(1)

    params = init_params(k_p, C * H * W, HIDDEN, N_ACTIONS, N_PLAYERS)

    # TODO(synk): mcts_steps > 0 branch (Runner MCTS search) has no clean
    # Pallas equivalent (data-dependent tree search); forward here uses the
    # raw actor, matching mcts_steps == 0.
    actions, logits = agent_greedy_actions(player_id, game_states, params)
    jax.block_until_ready((actions, logits))

    # Sanity check against a plain-JAX reference using the same numerics
    # (bf16 matmul operands, f32 accumulation, player row folded into bias).
    x_bf = game_states.reshape(B, -1).astype(jnp.bfloat16)
    b1_eff = params["b1"] + params["w1_player"][player_id][None, :]
    hid = jnp.maximum(
        jnp.dot(x_bf, params["w1"], preferred_element_type=jnp.float32) + b1_eff,
        0.0)
    ref_logits = (jnp.dot(hid.astype(jnp.bfloat16), params["w2"],
                          preferred_element_type=jnp.float32)
                  + params["b2"])[:, :N_ACTIONS]
    ref_actions = jnp.argmax(ref_logits, axis=-1).astype(jnp.int32)

    assert logits.shape == (B, N_ACTIONS) and actions.shape == (B,)
    assert jnp.allclose(logits, ref_logits, atol=1e-2, rtol=1e-2)
    assert jnp.array_equal(actions, ref_actions)

    print("KERNEL_OK")
</pallas_src>

<mosaic_0001>
module attributes {stable_mosaic.version = 11 : i64} {
  func.func @_actor_greedy_kernel(%arg0: i32, %arg1: memref<1xi32, #tpu.memory_space<smem>>, %arg2: memref<8x1024xf32, #tpu.memory_space<vmem>>, %arg3: memref<1024x128xbf16, #tpu.memory_space<vmem>>, %arg4: memref<2x128xf32, #tpu.memory_space<vmem>>, %arg5: memref<1x128xf32, #tpu.memory_space<vmem>>, %arg6: memref<128x128xbf16, #tpu.memory_space<vmem>>, %arg7: memref<1x128xf32, #tpu.memory_space<vmem>>, %arg8: memref<8x128xf32, #tpu.memory_space<vmem>>) attributes {dimension_semantics = [#tpu.dimension_semantics<parallel>], iteration_bounds = array<i64: 1>, scalar_prefetch = 1 : i64, scratch_operands = 0 : i64, tpu.core_type = #tpu.core_type<tc>, window_params = [{transform_indices = @transform_0, window_bounds = array<i64: 8, 1024>}, {pipeline_mode = #tpu.pipeline_mode<synchronous>, transform_indices = @transform_1, window_bounds = array<i64: 1024, 128>}, {pipeline_mode = #tpu.pipeline_mode<synchronous>, transform_indices = @transform_2, window_bounds = array<i64: 2, 128>}, {pipeline_mode = #tpu.pipeline_mode<synchronous>, transform_indices = @transform_3, window_bounds = array<i64: 1, 128>}, {pipeline_mode = #tpu.pipeline_mode<synchronous>, transform_indices = @transform_4, window_bounds = array<i64: 128, 128>}, {pipeline_mode = #tpu.pipeline_mode<synchronous>, transform_indices = @transform_5, window_bounds = array<i64: 1, 128>}, {transform_indices = @transform_6, window_bounds = array<i64: 8, 128>}]} {
    %c0 = arith.constant 0 : index
    %c0_0 = arith.constant 0 : index
    %0 = vector.load %arg2[%c0, %c0_0] : memref<8x1024xf32, #tpu.memory_space<vmem>>, vector<8x1024xf32>
    %1 = arith.truncf %0 : vector<8x1024xf32> to vector<8x1024xbf16>
    %c0_1 = arith.constant 0 : index
    %c0_2 = arith.constant 0 : index
    %2 = vector.load %arg3[%c0_1, %c0_2] : memref<1024x128xbf16, #tpu.memory_space<vmem>>, vector<1024x128xbf16>
    %cst = arith.constant dense<0.000000e+00> : vector<8x128xf32>
    %3 = tpu.matmul %1, %2, %cst {dimension_numbers = #tpu.dot_dimension_numbers<[1], [0], [0], [1], [0, 0, 1, 1], [], []>} : vector<8x1024xbf16>, vector<1024x128xbf16>, vector<8x128xf32> -> vector<8x128xf32>
    %c0_3 = arith.constant 0 : index
    %c0_4 = arith.constant 0 : index
    %4 = vector.load %arg5[%c0_3, %c0_4] : memref<1x128xf32, #tpu.memory_space<vmem>>, vector<1x128xf32>
    %c0_5 = arith.constant 0 : index
    %5 = memref.load %arg1[%c0_5] : memref<1xi32, #tpu.memory_space<smem>>
    %6 = arith.index_cast %5 : i32 to index
    %c0_6 = arith.constant 0 : index
    %7 = vector.load %arg4[%6, %c0_6] : memref<2x128xf32, #tpu.memory_space<vmem>>, vector<1x128xf32>
    %8 = arith.addf %4, %7 : vector<1x128xf32>
    %9 = vector.broadcast %8 : vector<1x128xf32> to vector<8x128xf32>
    %10 = arith.addf %3, %9 : vector<8x128xf32>
    %cst_7 = arith.constant 0.000000e+00 : f32
    %11 = vector.broadcast %cst_7 : f32 to vector<8x128xf32>
    %12 = arith.maximumf %10, %11 : vector<8x128xf32>
    %13 = arith.truncf %12 : vector<8x128xf32> to vector<8x128xbf16>
    %c0_8 = arith.constant 0 : index
    %c0_9 = arith.constant 0 : index
    %14 = vector.load %arg6[%c0_8, %c0_9] : memref<128x128xbf16, #tpu.memory_space<vmem>>, vector<128x128xbf16>
    %cst_10 = arith.constant dense<0.000000e+00> : vector<8x128xf32>
    %15 = tpu.matmul %13, %14, %cst_10 {dimension_numbers = #tpu.dot_dimension_numbers<[1], [0], [0], [1], [0, 0, 1, 1], [], []>} : vector<8x128xbf16>, vector<128x128xbf16>, vector<8x128xf32> -> vector<8x128xf32>
    %c0_11 = arith.constant 0 : index
    %c0_12 = arith.constant 0 : index
    %16 = vector.load %arg7[%c0_11, %c0_12] : memref<1x128xf32, #tpu.memory_space<vmem>>, vector<1x128xf32>
    %17 = vector.broadcast %16 : vector<1x128xf32> to vector<8x128xf32>
    %18 = arith.addf %15, %17 : vector<8x128xf32>
    %19 = tpu.iota {dimensions = array<i32: 1>} : vector<8x128xi32>
    %c16_i32 = arith.constant 16 : i32
    %20 = vector.broadcast %c16_i32 : i32 to vector<8x128xi32>
    %21 = arith.cmpi slt, %19, %20 : vector<8x128xi32>
    %cst_13 = arith.constant 0xFF800000 : f32
    %22 = vector.broadcast %cst_13 : f32 to vector<8x128xf32>
    %23 = arith.select %21, %18, %22 : vector<8x128xi1>, vector<8x128xf32>
    %cst_14 = arith.constant dense<0xFF800000> : vector<8xf32>
    %24 = vector.multi_reduction <maximumf>, %23, %cst_14 [1] : vector<8x128xf32> to vector<8xf32>
    %25 = vector.shape_cast %24 : vector<8xf32> to vector<8x1xf32>
    %26 = vector.broadcast %25 : vector<8x1xf32> to vector<8x128xf32>
    %27 = arith.cmpf oeq, %23, %26 : vector<8x128xf32>
    %28 = arith.andi %27, %21 : vector<8x128xi1>
    %c2147483647_i32 = arith.constant 2147483647 : i32
    %29 = vector.broadcast %c2147483647_i32 : i32 to vector<8x128xi32>
    %30 = arith.select %28, %19, %29 : vector<8x128xi1>, vector<8x128xi32>
    %cst_15 = arith.constant dense<2147483647> : vector<8xi32>
    %31 = vector.multi_reduction <minsi>, %30, %cst_15 [1] : vector<8x128xi32> to vector<8xi32>
    %32 = vector.shape_cast %31 : vector<8xi32> to vector<8x1xi32>
    %c16_i32_16 = arith.constant 16 : i32
    %33 = vector.broadcast %c16_i32_16 : i32 to vector<8x128xi32>
    %34 = arith.cmpi eq, %19, %33 : vector<8x128xi32>
    %35 = arith.sitofp %32 : vector<8x1xi32> to vector<8x1xf32>
    %36 = vector.shape_cast %35 : vector<8x1xf32> to vector<8x1xf32>
    %37 = vector.broadcast %36 : vector<8x1xf32> to vector<8x128xf32>
    %38 = arith.select %34, %37, %18 : vector<8x128xi1>, vector<8x128xf32>
    %c0_17 = arith.constant 0 : index
    %c0_18 = arith.constant 0 : index
    %39 = vector.load %arg8[%c0_17, %c0_18] : memref<8x128xf32, #tpu.memory_space<vmem>>, vector<8x128xf32>
    tpu.vector_store %arg8[%c0_17, %c0_18], %38 {strides = array<i32>} : memref<8x128xf32, #tpu.memory_space<vmem>>, vector<8x128xf32>,
    return
  }
  func.func @transform_0(%arg0: i32, %arg1: memref<1xi32, #tpu.memory_space<smem>>) -> (i32, i32) {
    %c0_i32 = arith.constant 0 : i32
    %c0_i32_0 = arith.constant 0 : i32
    return %arg0, %c0_i32 : i32, i32
  }
  func.func @transform_1(%arg0: i32, %arg1: memref<1xi32, #tpu.memory_space<smem>>) -> (i32, i32) {
    %c0_i32 = arith.constant 0 : i32
    %c0_i32_0 = arith.constant 0 : i32
    %c0_i32_1 = arith.constant 0 : i32
    return %c0_i32, %c0_i32_0 : i32, i32
  }
  func.func @transform_2(%arg0: i32, %arg1: memref<1xi32, #tpu.memory_space<smem>>) -> (i32, i32) {
    %c0_i32 = arith.constant 0 : i32
    %c0_i32_0 = arith.constant 0 : i32
    %c0_i32_1 = arith.constant 0 : i32
    return %c0_i32, %c0_i32_0 : i32, i32
  }
  func.func @transform_3(%arg0: i32, %arg1: memref<1xi32, #tpu.memory_space<smem>>) -> (i32, i32) {
    %c0_i32 = arith.constant 0 : i32
    %c0_i32_0 = arith.constant 0 : i32
    %c0_i32_1 = arith.constant 0 : i32
    return %c0_i32, %c0_i32_0 : i32, i32
  }
  func.func @transform_4(%arg0: i32, %arg1: memref<1xi32, #tpu.memory_space<smem>>) -> (i32, i32) {
    %c0_i32 = arith.constant 0 : i32
    %c0_i32_0 = arith.constant 0 : i32
    %c0_i32_1 = arith.constant 0 : i32
    return %c0_i32, %c0_i32_0 : i32, i32
  }
  func.func @transform_5(%arg0: i32, %arg1: memref<1xi32, #tpu.memory_space<smem>>) -> (i32, i32) {
    %c0_i32 = arith.constant 0 : i32
    %c0_i32_0 = arith.constant 0 : i32
    %c0_i32_1 = arith.constant 0 : i32
    return %c0_i32, %c0_i32_0 : i32, i32
  }
  func.func @transform_6(%arg0: i32, %arg1: memref<1xi32, #tpu.memory_space<smem>>) -> (i32, i32) {
    %c0_i32 = arith.constant 0 : i32
    %c0_i32_0 = arith.constant 0 : i32
    return %arg0, %c0_i32 : i32, i32
  }
}

</mosaic_0001>

<bundles_post_ra>
// kernel: tpu_custom_call.1
= control target key start
LH: loop header
LB: loop body
LE: loop exit
PB: predicated region body
PF: predicated region fallthrough
CT: control target
= control target key end

     0   :  { %13 = vsyncpa [#allocation5], 0  ;;  %s1430_s0 = inlined_call_operand.<no memory space> [shape: s32[1], index: 0, kind: input, shape index: {}]   ;;  %s1431_s1 = inlined_call_operand.hbm [shape: f32[2,1024], index: 1, kind: input, shape index: {}]   ;;  %s1432_s2 = inlined_call_operand.hbm [shape: bf16[1024,128], index: 2, kind: input, shape index: {}]   ;;  %s1433_s3 = inlined_call_operand.vmem [shape: f32[2,128], index: 3, kind: input, shape index: {}]   ;;  %s1434_s4 = inlined_call_operand.vmem [shape: f32[1,128], index: 4, kind: input, shape index: {}]   ;;  %s1435_s5 = inlined_call_operand.hbm [shape: bf16[128,128], index: 5, kind: input, shape index: {}]   ;;  %s1436_s6 = inlined_call_operand.vmem [shape: f32[1,128], index: 6, kind: input, shape index: {}]   ;;  %s1437_s7 = inlined_call_operand.hbm [shape: f32[2,128], index: 7, kind: output, shape index: {}]  }
   0x1   :  { %14 = vsyncpa [#allocation8], 0 }
   0x2   :  { %15 = vsyncpa [#allocation6], 0  ;;  %s33_s26 = sshll.u32 %s1432_s2, 4  ;;  %s34_s26 = int_to_ptr.hbm [resolvable:$true] %s33_s26 }
   0x3   :  { %19 = vsyncadd [#allocation5], 768  ;;  %s1356_s27 = smov [#allocation7]   ;;  %s20_s8 = sshll.u32 %s1431_s1, 4  ;;  %s21_s8 = int_to_ptr.hbm [resolvable:$true] %s20_s8 }
   0x4   :  { %s35_s28 = sshll.u32 %s1356_s27, 4  ;;  %s1357_s9 = smov 64   ;;  %s36_s28 = int_to_ptr.vmem [resolvable:$true] %s35_s28 }
   0x5   :  { %s1358_s10 = smov 4   ;;  %s1359_s11 = smov [#allocation4]  }
   0x6   :  { %41 = dma.hbm_to_vmem [thread:$0]  %s34_s26, 8192, %s36_s28, [#allocation8], %s1357_s9, %s1357_s9, %s1358_s10  }
   0x7   :  { %s22_s12 = sshll.u32 %s1359_s11, 4  ;;  %s1360_s13 = smov 256   ;;  %s23_s12 = int_to_ptr.vmem [resolvable:$true] %s22_s12 }
   0x8   :  { %s1361_s14 = smov 16   ;;  %s50_s16 = sshll.u32 %s1435_s5, 4  ;;  %s51_s16 = int_to_ptr.hbm [resolvable:$true] %s50_s16 }
   0x9   :  { %28 = dma.hbm_to_vmem [thread:$0]  %s21_s8, 256, %s23_s12, [#allocation5], %s1360_s13, %s1360_s13, %s1361_s14  }
   0xa   :  { %s1362_s17 = smov [#allocation9]  }
   0xb   :  { %s52_s18 = sshll.u32 %s1362_s17, 4  ;;  %s53_s18 = int_to_ptr.vmem [resolvable:$true] %s52_s18 }
   0xc   :  { %58 = dma.hbm_to_vmem [thread:$0]  %s51_s16, 1024, %s53_s18, [#allocation8], %s1357_s9, %s1357_s9, %s1358_s10  }
   0xd   :  { %1350 = dma.done.wait [#allocation5], 1024  }
   0xe   :  { %1351 = vsyncadd [#allocation5], 4294966272 }
   0xf   :  { %1352 = dma.done.wait [#allocation8], 9216  }
  0x10   :  { %1353 = vsyncadd [#allocation8], 4294958080  ;;  %v1178_v0 = vld [vmem:[#allocation7 + $0x38] sm:$0xff]  ;;  %v1177_v4 = vld [vmem:[#allocation7 + $0x30] sm:$0xff]  ;;  %s258_s21 = scalar_lea.vmem %s1433_s3, %s1430_s0 }
  0x11   :  { %v1186_v1 = vld [vmem:[#allocation7 + $0x78] sm:$0xff]  ;;  %648 = vmatpush.bf16.msra.mxu0 %v1178_v0  ;;  %v1185_v5 = vld [vmem:[#allocation7 + $0x70] sm:$0xff]  ;;  %v1176_v8 = vld [vmem:[#allocation7 + $0x28] sm:$0xff] }
  0x12   :  { %v1194_v2 = vld [vmem:[#allocation7 + $0xb8] sm:$0xff]  ;;  %661 = vmatpush.bf16.msra.mxu1 %v1186_v1  ;;  %v1193_v6 = vld [vmem:[#allocation7 + $0xb0] sm:$0xff]  ;;  %v1184_v9 = vld [vmem:[#allocation7 + $0x68] sm:$0xff] }
  0x13   :  { %v1202_v3 = vld [vmem:[#allocation7 + $0xf8] sm:$0xff]  ;;  %674 = vmatpush.bf16.msra.mxu2 %v1194_v2  ;;  %v1201_v7 = vld [vmem:[#allocation7 + $0xf0] sm:$0xff]  ;;  %v1192_v10 = vld [vmem:[#allocation7 + $0xa8] sm:$0xff] }
  0x14   :  { %687 = vmatpush.bf16.msra.mxu3 %v1202_v3  ;;  %v1200_v11 = vld [vmem:[#allocation7 + $0xe8] sm:$0xff]  ;;  %v1175_v12 = vld [vmem:[#allocation7 + $0x20] sm:$0xff]  ;;  %v1174_v16 = vld [vmem:[#allocation7 + $0x18] sm:$0xff] }
  0x15   :  { %649 = vmatpush.bf16.msra.mxu0 %v1177_v4  ;;  %v1183_v13 = vld [vmem:[#allocation7 + $0x60] sm:$0xff]  ;;  %v75_v18 = vld [vmem:[#allocation4 + $0x10] sm:$0xff]  ;;  %v1182_v19 = vld [vmem:[#allocation7 + $0x58] sm:$0xff] }
  0x16   :  { %662 = vmatpush.bf16.msra.mxu1 %v1185_v5  ;;  %v1191_v14 = vld [vmem:[#allocation7 + $0xa0] sm:$0xff]  ;;  %v79_v21 = vld [vmem:[#allocation4 + $0x30] sm:$0xff]  ;;  %v1190_v22 = vld [vmem:[#allocation7 + $0x98] sm:$0xff]  ;;  %91 = vst [vmem:[#allocation1 + $0x1] ss:$4 sm:$0xff] %v75_v18 }
  0x17   :  { %675 = vmatpush.bf16.msra.mxu2 %v1193_v6  ;;  %v1199_v15 = vld [vmem:[#allocation7 + $0xe0] sm:$0xff]  ;;  %v1198_v23 = vld [vmem:[#allocation7 + $0xd8] sm:$0xff]  ;;  %95 = vst [vmem:[#allocation1 + $0x3] ss:$4 sm:$0xff] %v79_v21  ;;  %v1173_v24 = vld [vmem:[#allocation7 + $0x10] sm:$0xff] }
  0x18   :  { %688 = vmatpush.bf16.msra.mxu3 %v1201_v7  ;;  %v73_v17 = vld [vmem:[#allocation4] sm:$0xff]  ;;  %v1181_v25 = vld [vmem:[#allocation7 + $0x50] sm:$0xff]  ;;  %v74_v28 = vld [vmem:[#allocation4 + $0x8] sm:$0xff] }
  0x19   :  { %650 = vmatpush.bf16.msra.mxu0 %v1176_v8  ;;  %v77_v20 = vld [vmem:[#allocation4 + $0x20] sm:$0xff]  ;;  %89 = vst [vmem:[#allocation1] ss:$4 sm:$0xff] %v73_v17  ;;  %v1189_v26 = vld [vmem:[#allocation7 + $0x90] sm:$0xff]  ;;  %v76_v29 = vld [vmem:[#allocation4 + $0x18] sm:$0xff] }
  0x1a   :  { %663 = vmatpush.bf16.msra.mxu1 %v1184_v9  ;;  %93 = vst [vmem:[#allocation1 + $0x2] ss:$4 sm:$0xff] %v77_v20  ;;  %v1197_v27 = vld [vmem:[#allocation7 + $0xd0] sm:$0xff]  ;;  %v1172_v30 = vld [vmem:[#allocation7 + $0x8] sm:$0xff]  ;;  %v1171_v35 = vld [vmem:[#allocation7] sm:$0xff] }
  0x1b   :  { %676 = vmatpush.bf16.msra.mxu2 %v1192_v10  ;;  %v1180_v31 = vld [vmem:[#allocation7 + $0x48] sm:$0xff]  ;;  %97 = vst [vmem:[#allocation1 + $0x20] ss:$4 sm:$0xff] %v74_v28  ;;  %v80_v36 = vld [vmem:[#allocation4 + $0x38] sm:$0xff]  ;;  %v1179_v37 = vld [vmem:[#allocation7 + $0x40] sm:$0xff] }
  0x1c   :  { %689 = vmatpush.bf16.msra.mxu3 %v1200_v11  ;;  %v1188_v32 = vld [vmem:[#allocation7 + $0x88] sm:$0xff]  ;;  %99 = vst [vmem:[#allocation1 + $0x21] ss:$4 sm:$0xff] %v76_v29  ;;  %v1187_v38 = vld [vmem:[#allocation7 + $0x80] sm:$0xff]  ;;  %v1210_v40 = vld [vmem:[#allocation7 + $0x138] sm:$0xff] }
  0x1d   :  { %651 = vmatpush.bf16.msra.mxu0 %v1175_v12  ;;  %v1196_v33 = vld [vmem:[#allocation7 + $0xc8] sm:$0xff]  ;;  %v1195_v39 = vld [vmem:[#allocation7 + $0xc0] sm:$0xff]  ;;  %v1218_v42 = vld [vmem:[#allocation7 + $0x178] sm:$0xff]  ;;  %103 = vst [vmem:[#allocation1 + $0x23] ss:$4 sm:$0xff] %v80_v36 }
  0x1e   :  { %664 = vmatpush.bf16.msra.mxu1 %v1183_v13  ;;  %v78_v34 = vld [vmem:[#allocation4 + $0x28] sm:$0xff]  ;;  %v1226_v46 = vld [vmem:[#allocation7 + $0x1b8] sm:$0xff]  ;;  %v1209_v52 = vld [vmem:[#allocation7 + $0x130] sm:$0xff] }
  0x1f   :  { %677 = vmatpush.bf16.msra.mxu2 %v1191_v14  ;;  %101 = vst [vmem:[#allocation1 + $0x22] ss:$4 sm:$0xff] %v78_v34  ;;  %v1234_v47 = vld [vmem:[#allocation7 + $0x1f8] sm:$0xff]  ;;  %v1217_v53 = vld [vmem:[#allocation7 + $0x170] sm:$0xff]  ;;  %v1208_v56 = vld [vmem:[#allocation7 + $0x128] sm:$0xff] }
  0x20   :  { %690 = vmatpush.bf16.msra.mxu3 %v1199_v15  ;;  %v1225_v54 = vld [vmem:[#allocation7 + $0x1b0] sm:$0xff]  ;;  %v1216_v57 = vld [vmem:[#allocation7 + $0x168] sm:$0xff]  ;;  %v1207_v60 = vld [vmem:[#allocation7 + $0x120] sm:$0xff] }
  0x21   :  { %652 = vmatpush.bf16.msra.mxu0 %v1174_v16  ;;  %v106_v41 = vld.sshfl [vmem:[#allocation1 + $0x10] sm:$0xff pattern:$0x73625140]  ;;  %v104_v43 = vld.sshfl [vmem:[#allocation1] sm:$0xff pattern:$0x73625140] }
  0x22   :  { %665 = vmatpush.bf16.msra.mxu1 %v1182_v19  ;;  %v107_v44 = vld.sshfl [vmem:[#allocation1 + $0x18] sm:$0xff pattern:$0x73625140]  ;;  %v105_v45 = vld.sshfl [vmem:[#allocation1 + $0x8] sm:$0xff pattern:$0x73625140]  ;;  %v122_v48 = vpack.c.bf16 %v106_v41, %v106_v41  ;;  %v120_v49 = vpack.c.bf16 %v104_v43, %v104_v43 }
  0x23   :  { %678 = vmatpush.bf16.msra.mxu2 %v1190_v22  ;;  %v123_v50 = vpack.c.bf16 %v107_v44, %v107_v44  ;;  %v121_v51 = vpack.c.bf16 %v105_v45, %v105_v45  ;;  %v1233_v55 = vld [vmem:[#allocation7 + $0x1f0] sm:$0xff]  ;;  %v1224_v58 = vld [vmem:[#allocation7 + $0x1a8] sm:$0xff]  ;;  %v1215_v61 = vld [vmem:[#allocation7 + $0x160] sm:$0xff] }
  0x24   :  { %691 = vmatpush.bf16.msra.mxu3 %v1198_v23  ;;  %v1232_v59 = vld [vmem:[#allocation7 + $0x1e8] sm:$0xff]  ;;  %v1223_v62 = vld [vmem:[#allocation7 + $0x1a0] sm:$0xff]  ;;  %v1206_v0 = vld [vmem:[#allocation7 + $0x118] sm:$0xff] }
  0x25   :  { %653 = vmatpush.bf16.msra.mxu0 %v1173_v24  ;;  %v1231_v63 = vld [vmem:[#allocation7 + $0x1e0] sm:$0xff]  ;;  %v1214_v1 = vld [vmem:[#allocation7 + $0x158] sm:$0xff]  ;;  %v1205_v4 = vld [vmem:[#allocation7 + $0x110] sm:$0xff] }
  0x26   :  { %666 = vmatpush.bf16.msra.mxu1 %v1181_v25  ;;  %v1222_v2 = vld [vmem:[#allocation7 + $0x198] sm:$0xff]  ;;  %v1213_v5 = vld [vmem:[#allocation7 + $0x150] sm:$0xff]  ;;  %v1204_v8 = vld [vmem:[#allocation7 + $0x108] sm:$0xff] }
  0x27   :  { %679 = vmatpush.bf16.msra.mxu2 %v1189_v26  ;;  %v1230_v3 = vld [vmem:[#allocation7 + $0x1d8] sm:$0xff]  ;;  %v1221_v6 = vld [vmem:[#allocation7 + $0x190] sm:$0xff]  ;;  %v1212_v9 = vld [vmem:[#allocation7 + $0x148] sm:$0xff] }
  0x28   :  { %692 = vmatpush.bf16.msra.mxu3 %v1197_v27  ;;  %v1229_v7 = vld [vmem:[#allocation7 + $0x1d0] sm:$0xff]  ;;  %v1220_v10 = vld [vmem:[#allocation7 + $0x188] sm:$0xff]  ;;  %v1203_v12 = vld [vmem:[#allocation7 + $0x100] sm:$0xff] }
  0x29   :  { %654 = vmatpush.bf16.msra.mxu0 %v1172_v30  ;;  %v1228_v11 = vld [vmem:[#allocation7 + $0x1c8] sm:$0xff]  ;;  %v1211_v13 = vld [vmem:[#allocation7 + $0x140] sm:$0xff]  ;;  %v108_v16 = vld.sshfl [vmem:[#allocation1 + $0x20] sm:$0xff pattern:$0x73625140] }
  0x2a   :  { %667 = vmatpush.bf16.msra.mxu1 %v1180_v31  ;;  %v1219_v14 = vld [vmem:[#allocation7 + $0x180] sm:$0xff]  ;;  %v110_v18 = vld.sshfl [vmem:[#allocation1 + $0x30] sm:$0xff pattern:$0x73625140]  ;;  %v124_v20 = vpack.c.bf16 %v108_v16, %v108_v16  ;;  %v1242_v24 = vld [vmem:[#allocation9 + $0x38] sm:$0xff] }
  0x2b   :  { %680 = vmatpush.bf16.msra.mxu2 %v1188_v32  ;;  %v1227_v15 = vld [vmem:[#allocation7 + $0x1c0] sm:$0xff]  ;;  %v111_v19 = vld.sshfl [vmem:[#allocation1 + $0x38] sm:$0xff pattern:$0x73625140]  ;;  %v126_v22 = vpack.c.bf16 %v110_v18, %v110_v18  ;;  %v1240_v26 = vld [vmem:[#allocation9 + $0x28] sm:$0xff] }
  0x2c   :  { %693 = vmatpush.bf16.msra.mxu3 %v1196_v33  ;;  %v109_v17 = vld.sshfl [vmem:[#allocation1 + $0x28] sm:$0xff pattern:$0x73625140]  ;;  %v127_v23 = vpack.c.bf16 %v111_v19, %v111_v19  ;;  %v1241_v25 = vld [vmem:[#allocation9 + $0x30] sm:$0xff]  ;;  %v1238_v28 = vld [vmem:[#allocation9 + $0x18] sm:$0xff] }
  0x2d   :  { %655 = vmatpush.bf16.msra.mxu0 %v1171_v35  ;;  %v125_v21 = vpack.c.bf16 %v109_v17, %v109_v17  ;;  %v1239_v27 = vld [vmem:[#allocation9 + $0x20] sm:$0xff]  ;;  %v1237_v30 = vld [vmem:[#allocation9 + $0x10] sm:$0xff]  ;;  %v1236_v32 = vld [vmem:[#allocation9 + $0x8] sm:$0xff] }
  0x2e   :  { %668 = vmatpush.bf16.msra.mxu1 %v1179_v37  ;;  %v256_v33 = vld [vmem:[%s1434_s4] sm:$0x1] }
  0x2f   :  { %681 = vmatpush.bf16.msra.mxu2 %v1187_v38  ;;  %v259_v34 = vld [vmem:[%s258_s21] sm:$0x1]  ;;  %v1235_v38 = vld [vmem:[#allocation9] sm:$0xff] }
  0x30   :  { %694 = vmatpush.bf16.msra.mxu3 %v1195_v39  ;;  %656 = vmatmul.bf16.vlgmr.msra.gmra.mxu0 %v120_v49  ;;  %v260_v39 = vadd.f32 %v259_v34, %v256_v33 }
  0x31   :  { %700 = vmatpush.bf16.msrb.mxu0 %v1210_v40  ;;  %669 = vmatmul.bf16.vlgmr.msra.gmra.mxu1 %v121_v51 }
  0x32   :  { %713 = vmatpush.bf16.msrb.mxu1 %v1218_v42  ;;  %682 = vmatmul.bf16.vlgmr.msra.gmra.mxu2 %v122_v48  ;;  %v262_v41 = vperm.slane %v260_v39, 0 }
  0x33   :  { %726 = vmatpush.bf16.msrb.mxu2 %v1226_v46  ;;  %695 = vmatmul.bf16.vlgmr.msra.gmra.mxu3 %v123_v50 }
  0x34   :  { %739 = vmatpush.bf16.msrb.mxu3 %v1234_v47 }
  0x35   :  { %701 = vmatpush.bf16.msrb.mxu0 %v1209_v52 }
  0x36   :  { %714 = vmatpush.bf16.msrb.mxu1 %v1217_v53 }
  0x37   :  { %727 = vmatpush.bf16.msrb.mxu2 %v1225_v54 }
  0x38   :  { %740 = vmatpush.bf16.msrb.mxu3 %v1233_v55 }
  0x39   :  { %702 = vmatpush.bf16.msrb.mxu0 %v1208_v56 }
  0x3a   :  { %715 = vmatpush.bf16.msrb.mxu1 %v1216_v57 }
  0x3b   :  { %728 = vmatpush.bf16.msrb.mxu2 %v1224_v58 }
  0x3c   :  { %741 = vmatpush.bf16.msrb.mxu3 %v1232_v59 }
  0x3d   :  { %703 = vmatpush.bf16.msrb.mxu0 %v1207_v60 }
  0x3e   :  { %716 = vmatpush.bf16.msrb.mxu1 %v1215_v61 }
  0x3f   :  { %729 = vmatpush.bf16.msrb.mxu2 %v1223_v62  ;;  %v835_v62 = vlaneseq }
  0x40   :  { %742 = vmatpush.bf16.msrb.mxu3 %v1231_v63 }
  0x41   :  { %704 = vmatpush.bf16.msrb.mxu0 %v1206_v0  ;;  %v836_v63 = vand.u32 127, %v835_v62  ;;  %v1253_v0 = vld [vmem:[%s1436_s6] ss:$0 sm:$0xff] }
  0x42   :  { %717 = vmatpush.bf16.msrb.mxu1 %v1214_v1 }
  0x43   :  { %730 = vmatpush.bf16.msrb.mxu2 %v1222_v2  ;;  %vm837_vm0 = vcmp.lt.s32.totalorder %v836_v63, 16  ;;  %vm858_vm4 = vcmp.eq.s32.totalorder %v836_v63, 16 }
  0x44   :  { %743 = vmatpush.bf16.msrb.mxu3 %v1230_v3 }
  0x45   :  { %705 = vmatpush.bf16.msrb.mxu0 %v1205_v4 }
  0x46   :  { %718 = vmatpush.bf16.msrb.mxu1 %v1213_v5 }
  0x47   :  { %731 = vmatpush.bf16.msrb.mxu2 %v1221_v6 }
  0x48   :  { %744 = vmatpush.bf16.msrb.mxu3 %v1229_v7 }
  0x49   :  { %706 = vmatpush.bf16.msrb.mxu0 %v1204_v8 }
  0x4a   :  { %719 = vmatpush.bf16.msrb.mxu1 %v1212_v9 }
  0x4b   :  { %732 = vmatpush.bf16.msrb.mxu2 %v1220_v10 }
  0x4c   :  { %745 = vmatpush.bf16.msrb.mxu3 %v1228_v11 }
  0x4d   :  { %707 = vmatpush.bf16.msrb.mxu0 %v1203_v12 }
  0x4e   :  { %720 = vmatpush.bf16.msrb.mxu1 %v1211_v13 }
  0x4f   :  { %733 = vmatpush.bf16.msrb.mxu2 %v1219_v14 }
  0x50   :  { %746 = vmatpush.bf16.msrb.mxu3 %v1227_v15  ;;  %708 = vmatmul.bf16.vlgmr.msrb.gmra.mxu0 %v124_v20 }
  0x51   :  { %721 = vmatmul.bf16.vlgmr.msrb.gmra.mxu1 %v125_v21  ;;  %822 = vmatpush.bf16.msra.mxu0 %v1242_v24 }
  0x52   :  { %734 = vmatmul.bf16.vlgmr.msrb.gmra.mxu2 %v126_v22 }
  0x53   :  { %747 = vmatmul.bf16.vlgmr.msrb.gmra.mxu3 %v127_v23 }
  0x55   :  { %823 = vmatpush.bf16.msra.mxu0 %v1241_v25 }
  0x59   :  { %824 = vmatpush.bf16.msra.mxu0 %v1240_v26 }
  0x5d   :  { %825 = vmatpush.bf16.msra.mxu0 %v1239_v27 }
  0x61   :  { %826 = vmatpush.bf16.msra.mxu0 %v1238_v28 }
  0x65   :  { %827 = vmatpush.bf16.msra.mxu0 %v1237_v30 }
  0x69   :  { %828 = vmatpush.bf16.msra.mxu0 %v1236_v32 }
  0x6d   :  { %829 = vmatpush.bf16.msra.mxu0 %v1235_v38 }
  0xad   :  { %v657_v29 = vpop.f32.mrf.mxu0 }
  0xae   :  { %v670_v31 = vpop.f32.mrf.mxu1  ;;  %v658_v44 = vadd.f32 %v657_v29, %v262_v41 }
  0xb0   :  { %v671_v45 = vadd.f32 %v670_v31, %v658_v44 }
  0xb5   :  { %v683_v35 = vpop.f32.mrf.mxu2  ;;  %v659_v37 = vpop.f32.mrf.mxu0 }
  0xb6   :  { %v696_v36 = vpop.f32.mrf.mxu3  ;;  %v672_v40 = vpop.f32.mrf.mxu1  ;;  %v684_v46 = vadd.f32 %v683_v35, %v671_v45 }
  0xb8   :  { %v697_v47 = vadd.f32 %v696_v36, %v684_v46 }
  0xbd   :  { %v685_v42 = vpop.f32.mrf.mxu2 }
  0xbe   :  { %v698_v43 = vpop.f32.mrf.mxu3 }
  0xcd   :  { %v709_v48 = vpop.f32.mrf.mxu0 }
  0xce   :  { %v722_v49 = vpop.f32.mrf.mxu1  ;;  %v710_v50 = vadd.f32 %v709_v48, %v697_v47 }
  0xd0   :  { %v723_v51 = vadd.f32 %v722_v49, %v710_v50 }
  0xd5   :  { %v735_v52 = vpop.f32.mrf.mxu2  ;;  %v711_v55 = vpop.f32.mrf.mxu0 }
  0xd6   :  { %v748_v53 = vpop.f32.mrf.mxu3  ;;  %v736_v54 = vadd.f32 %v735_v52, %v723_v51  ;;  %v724_v56 = vpop.f32.mrf.mxu1 }
  0xd8   :  { %v749_v57 = vadd.f32 %v748_v53, %v736_v54 }
  0xda   :  { %v752_v58 = vmax.f32 %v749_v57, 0.0 }
  0xdc   :  { %v753_v59 = vpack.c.bf16 %v752_v58, %v752_v58 }
  0xdd   :  { %v737_v60 = vpop.f32.mrf.mxu2 }
  0xde   :  { %v750_v61 = vpop.f32.mrf.mxu3  ;;  %830 = vmatmul.bf16.vlgmr.msra.gmra.mxu0 %v753_v59 }
 0x15b   :  { %v831_v1 = vpop.f32.mrf.mxu0 }
 0x15c   :  { %v832_v2 = vadd.f32 %v1253_v0, %v831_v1 }
 0x15e   :  { %v838_v3 = vsel %vm837_vm0, %v832_v2, -inf }
 0x15f   :  { %839 = vmax.xlane.f32.xlu0 %v838_v3 }
 0x163   :  { %v833_v4 = vpop.f32.mrf.mxu0 }
 0x1d2   :  { %v840_v5 = vpop.xlane.xlu0 %839 }
 0x1d3   :  { %vm841_vm1 = vcmp.eq.f32.partialorder %v838_v3, %v840_v5 }
 0x1d4   :  { %vm842_vm2 = vmand %vm841_vm1, %vm837_vm0 }
 0x1d5   :  { %v843_v6 = vsel %vm842_vm2, %v836_v63, 2147483647 }
 0x1d6   :  { %v845_v7 = vshra.s32 %v843_v6, 16  ;;  %v844_v9 = vand.u32 65535, %v843_v6 }
 0x1d8   :  { %v847_v8 = vcvt.s32.f32 %v845_v7  ;;  %v846_v11 = vcvt.s32.f32 %v844_v9 }
 0x1da   :  { %848 = vmin.xlane.f32.xlu0 %v847_v8 }
 0x24d   :  { %v849_v10 = vpop.xlane.xlu0 %848 }
 0x24e   :  { %vm850_vm3 = vcmp.eq.f32.partialorder %v847_v8, %v849_v10  ;;  %v855_v13 = vcvt.f32.s32 %v849_v10 }
 0x24f   :  { %v851_v12 = vsel %vm850_vm3, %v846_v11, inf }
 0x250   :  { %852 = vmin.xlane.f32.xlu1 %v851_v12  ;;  %v856_v15 = vshll.u32 %v855_v13, 16 }
 0x2c3   :  { %v853_v14 = vpop.xlane.xlu1 %852 }
 0x2c4   :  { %v854_v16 = vcvt.f32.s32 %v853_v14 }
 0x2c6   :  { %v857_v17 = vadd.s32 %v856_v15, %v854_v16 }
 0x2c8   :  { %v859_v18 = vcvt.s32.f32 %v857_v17 }
 0x2ca   :  { %v860_v19 = vsel %vm858_vm4, %v859_v18, %v832_v2 }
 0x2cb   :  { %861 = vst [vmem:[#allocation10] sm:$0xff] %v860_v19 }
 0x2cc   :  { %865 = vsyncadd [#allocation6], 96  ;;  %s868_s24 = sshll.u32 %s1437_s7, 4  ;;  %s1363_s25 = smov [#allocation10]   ;;  %s869_s24 = int_to_ptr.hbm [resolvable:$true] %s868_s24 }
 0x2cd   :  { %s866_s26 = sshll.u32 %s1363_s25, 4  ;;  %s1364_s27 = smov 32   ;;  %s867_s26 = int_to_ptr.vmem [resolvable:$true] %s866_s26 }
 0x2ce   :  { %s1365_s28 = smov 2  }
 0x2cf   :  { %874 = dma.vmem_to_hbm [thread:$0]  %s867_s26, 32, %s869_s24, [#allocation6], %s1364_s27, %s1364_s27, %s1365_s28  }
 0x2d0   :  { %1354 = dma.done.wait [#allocation6], 128  }
 0x2d1   :  { %1355 = vsyncadd [#allocation6], 4294967168 }
 0x2d2   :  { %879 = vsyncpa [#allocation5], 1 }
 0x2d3   :  { %880 = vsyncpa [#allocation8], 1 }
 0x2d4   :  { %881 = vsyncpa [#allocation6], 1 }

</bundles_post_ra>
